<compile_context>
chip_gen: v7x
topology: tpu7x:2x2x1
jax: 0.10.0
libtpu: 0.0.40
codegen_flags: <defaults>
</compile_context>

<pallas_src>
import jax
import jax.numpy as jnp
from jax.experimental import pallas as pl
from jax.experimental.pallas import tpu as pltpu


def _round_up(n: int, m: int) -> int:
    return ((n + m - 1) // m) * m


def _pick_tile(total: int, tile_max: int, quantum: int) -> int:
    """Tile size that is a multiple of `quantum`; if the whole extent fits in
    tile_max use it, otherwise pick the tile (<= tile_max) minimizing padding
    of `total` up to a tile multiple (ties -> larger tile)."""
    t_full = _round_up(total, quantum)
    if t_full <= tile_max:
        return t_full
    best_t, best_pad = quantum, None
    t = (tile_max // quantum) * quantum
    while t >= quantum:
        pad = _round_up(total, t) - total
        if best_pad is None or pad < best_pad:
            best_t, best_pad = t, pad
        t -= quantum
    return best_t


def _vmem_limit(need_bytes: int) -> int:
    # Generous headroom over the estimated buffer bytes, clamped to a value
    # that is safe on every generation (v7x has 64 MiB physical VMEM).
    return min(max(2 * need_bytes + (8 << 20), 32 << 20), 64 << 20)


# --------------------------- kernel 1: shared core --------------------------
def core_kernel(x_ref, wc_ref, bc_ref, h_ref):
    """h = relu(x @ Wc + bc), one batch tile per grid step.

    x_ref:  (TB, Din)    bf16
    wc_ref: (Din, Dcore) bf16   grid-invariant, single-buffered
    bc_ref: (1, Dcore)   f32    grid-invariant, single-buffered
    h_ref:  (TB, Dcore)  bf16
    """
    h = jnp.dot(x_ref[...], wc_ref[...], preferred_element_type=jnp.float32)
    h = jnp.maximum(h + bc_ref[...], 0.0)
    h_ref[...] = h.astype(h_ref.dtype)


# --------------------------- kernel 2: packed heads --------------------------
def heads_kernel(h_ref, wh_ref, bh_ref, o_ref):
    """All concept heads of this N-tile in one wide lane-dense MXU matmul.

    h_ref:  (TB, Dcore) bf16   shared core activations
    wh_ref: (Dcore, TN) bf16   packed head weights (concat of per-concept cols)
    bh_ref: (1, TN)     f32    packed head biases
    o_ref:  (TB, TN)    f32/bf16 packed logits tile
    """
    out = jnp.dot(h_ref[...], wh_ref[...], preferred_element_type=jnp.float32)
    o_ref[...] = (out + bh_ref[...]).astype(o_ref.dtype)


def concepts_clf_forward(x, wc, bc, head_ws, head_bs, *,
                         tb_max=256, tn_max=1024, out_dtype=jnp.float32):
    """x: [B, Din]; wc: [Din, Dcore]; bc: [Dcore];
    head_ws[i]: [Dcore, card_i]; head_bs[i]: [card_i].
    Returns a list of [B, card_i] logits, like the PyTorch module."""
    B, Din = x.shape
    Dcore = wc.shape[1]
    cards = [int(w.shape[1]) for w in head_ws]
    offsets = [0]
    for c in cards:
        offsets.append(offsets[-1] + c)
    n_total = offsets[-1]

    # ---- pack all heads by actual cardinality into one lane-dense slab ----
    n_pad0 = _round_up(n_total, 128)
    tn = n_pad0 if n_pad0 <= tn_max else _pick_tile(n_total, tn_max, 256)
    n_pad = _round_up(n_total, tn)                      # guarantees tn | n_pad
    wh = jnp.concatenate(head_ws, axis=1)
    bh = jnp.concatenate(head_bs)
    wh = jnp.pad(wh, ((0, 0), (0, n_pad - n_total)))    # zero pad -> harmless
    bh = jnp.pad(bh, (0, n_pad - n_total))[None, :]

    # ---- batch tiling: multiples of 16 (bf16 sublane packing), min padding --
    tb = _pick_tile(B, tb_max, 16)
    b_pad = _round_up(B, tb)
    if b_pad != B:
        x = jnp.pad(x, ((0, b_pad - B), (0, 0)))

    # bf16 operands for MXU throughput; bias add / accumulation stay f32.
    # TODO(synk): optionally quantize wh to fp8 (v7x) / int8 (v5e,v6e) to halve
    # the dominant head-weight HBM read; kept bf16 to preserve f32-like math.
    x_b = x.astype(jnp.bfloat16)
    wc_b = wc.astype(jnp.bfloat16)
    wh_b = wh.astype(jnp.bfloat16)
    bc_f = bc.astype(jnp.float32).reshape(1, Dcore)
    bh_f = bh.astype(jnp.float32)

    # ------------------- core pass: h = relu(x @ Wc + bc) -------------------
    # TODO(synk): K-tile Din/Dcore with an f32 accumulator if Din*Dcore ever
    # outgrows VMEM (v7x: 64 MiB physical); unnecessary at these sizes.
    core_need = (2 * tb * Din * 2            # x, double-buffered
                 + 1 * Din * Dcore * 2       # wc, Buffered(1)
                 + 1 * Dcore * 4             # bc, Buffered(1)
                 + 2 * tb * Dcore * 2)       # h out, double-buffered
    core_cost = pl.CostEstimate(
        flops=2 * b_pad * Din * Dcore,
        transcendentals=0,
        bytes_accessed=(b_pad * Din * 2 + Din * Dcore * 2 + Dcore * 4
                        + b_pad * Dcore * 2),
    )
    h = pl.pallas_call(
        core_kernel,
        out_shape=jax.ShapeDtypeStruct((b_pad, Dcore), jnp.bfloat16),
        grid_spec=pltpu.PrefetchScalarGridSpec(
            num_scalar_prefetch=0,
            grid=(b_pad // tb,),
            in_specs=[
                pl.BlockSpec((tb, Din), lambda i: (i, 0)),
                pl.BlockSpec((Din, Dcore), lambda i: (0, 0),
                             pipeline_mode=pl.Buffered(1)),   # grid-invariant
                pl.BlockSpec((1, Dcore), lambda i: (0, 0),
                             pipeline_mode=pl.Buffered(1)),   # grid-invariant
            ],
            out_specs=pl.BlockSpec((tb, Dcore), lambda i: (i, 0)),
        ),
        compiler_params=pltpu.CompilerParams(
            dimension_semantics=("parallel",),
            vmem_limit_bytes=_vmem_limit(core_need),
        ),
        cost_estimate=core_cost,
    )(x_b, wc_b, bc_f)

    # ----------------- head pass: packed logits = h @ Wh + bh ----------------
    out_bytes = jnp.dtype(out_dtype).itemsize
    heads_need = (2 * tb * Dcore * 2         # h tile, double-buffered
                  + 3 * Dcore * tn * 2       # wh tile, Buffered(3)
                  + 3 * tn * 4               # bh tile, Buffered(3)
                  + 2 * tb * tn * out_bytes) # output tile, double-buffered
    heads_cost = pl.CostEstimate(
        flops=2 * b_pad * Dcore * n_pad,
        transcendentals=0,
        bytes_accessed=(b_pad * Dcore * 2 + Dcore * n_pad * 2 + n_pad * 4
                        + b_pad * n_pad * out_bytes),
    )
    out = pl.pallas_call(
        heads_kernel,
        out_shape=jax.ShapeDtypeStruct((b_pad, n_pad), out_dtype),
        grid_spec=pltpu.PrefetchScalarGridSpec(
            num_scalar_prefetch=0,
            # Packed-head (N) axis leads: with small B (often a single batch
            # tile) this is the axis worth splitting across v7x TensorCores.
            grid=(n_pad // tn, b_pad // tb),
            in_specs=[
                pl.BlockSpec((tb, Dcore), lambda j, i: (i, 0)),
                pl.BlockSpec((Dcore, tn), lambda j, i: (0, j),
                             pipeline_mode=pl.Buffered(3)),   # streamed weights
                pl.BlockSpec((1, tn), lambda j, i: (0, j),
                             pipeline_mode=pl.Buffered(3)),
            ],
            out_specs=pl.BlockSpec((tb, tn), lambda j, i: (i, j)),
        ),
        compiler_params=pltpu.CompilerParams(
            dimension_semantics=("parallel", "parallel"),
            vmem_limit_bytes=_vmem_limit(heads_need),
        ),
        cost_estimate=heads_cost,
    )(h, wh_b, bh_f)

    # Static per-concept slices of the packed logit slab (PyTorch list output).
    return [out[:B, offsets[i]:offsets[i + 1]] for i in range(len(cards))]


if __name__ == "__main__":
    key = jax.random.PRNGKey(0)

    # Small synthetic shapes implied by the forward pass.
    B, Din, Dcore = 8, 32, 32          # batch, input dim, core_out_dim
    cards = [3, 5, 7]                  # c_cards: per-concept cardinalities

    keys = jax.random.split(key, 3 + 2 * len(cards))
    x = jax.random.normal(keys[0], (B, Din), jnp.float32)

    # Shared core params (deepcopy => identical across concepts).
    wc = jax.random.normal(keys[1], (Din, Dcore), jnp.float32) * 0.1
    bc = jax.random.normal(keys[2], (Dcore,), jnp.float32) * 0.01

    # Per-concept head params at their true cardinalities.
    head_ws, head_bs = [], []
    for i, c in enumerate(cards):
        head_ws.append(jax.random.normal(keys[3 + 2 * i], (Dcore, c), jnp.float32) * 0.1)
        head_bs.append(jax.random.normal(keys[4 + 2 * i], (c,), jnp.float32) * 0.01)

    outs = concepts_clf_forward(x, wc, bc, head_ws, head_bs)
    outs = jax.block_until_ready(outs)

    # Pure-JAX reference replicating the kernel's bf16-operand / f32-accumulate math.
    def _bf(a):
        return a.astype(jnp.bfloat16).astype(jnp.float32)

    h_ref = jnp.maximum(_bf(x) @ _bf(wc) + bc[None, :], 0.0)
    h_ref = _bf(h_ref)  # h is materialized as bf16 between the two kernels
    for i, c in enumerate(cards):
        ref_i = h_ref @ _bf(head_ws[i]) + head_bs[i][None, :]
        assert outs[i].shape == (B, c), f"bad shape for concept {i}: {outs[i].shape}"
        assert jnp.allclose(outs[i], ref_i, atol=1e-3, rtol=1e-3), f"mismatch at concept {i}"

    print("KERNEL_OK")
</pallas_src>

<mosaic_0001>
module attributes {stable_mosaic.version = 11 : i64} {
  func.func @core_kernel(%arg0: i32, %arg1: memref<16x32xbf16, #tpu.memory_space<vmem>>, %arg2: memref<32x32xbf16, #tpu.memory_space<vmem>>, %arg3: memref<1x32xf32, #tpu.memory_space<vmem>>, %arg4: memref<16x32xbf16, #tpu.memory_space<vmem>>) attributes {dimension_semantics = [#tpu.dimension_semantics<parallel>], iteration_bounds = array<i64: 1>, scalar_prefetch = 0 : i64, scratch_operands = 0 : i64, tpu.core_type = #tpu.core_type<tc>, window_params = [{transform_indices = @transform_0, window_bounds = array<i64: 16, 32>}, {pipeline_mode = #tpu.pipeline_mode<synchronous>, transform_indices = @transform_1, window_bounds = array<i64: 32, 32>}, {pipeline_mode = #tpu.pipeline_mode<synchronous>, transform_indices = @transform_2, window_bounds = array<i64: 1, 32>}, {transform_indices = @transform_3, window_bounds = array<i64: 16, 32>}]} {
    %c0 = arith.constant 0 : index
    %c0_0 = arith.constant 0 : index
    %0 = vector.load %arg1[%c0, %c0_0] : memref<16x32xbf16, #tpu.memory_space<vmem>>, vector<16x32xbf16>
    %c0_1 = arith.constant 0 : index
    %c0_2 = arith.constant 0 : index
    %1 = vector.load %arg2[%c0_1, %c0_2] : memref<32x32xbf16, #tpu.memory_space<vmem>>, vector<32x32xbf16>
    %cst = arith.constant dense<0.000000e+00> : vector<16x32xf32>
    %2 = tpu.matmul %0, %1, %cst {dimension_numbers = #tpu.dot_dimension_numbers<[1], [0], [0], [1], [0, 0, 1, 1], [], []>} : vector<16x32xbf16>, vector<32x32xbf16>, vector<16x32xf32> -> vector<16x32xf32>
    %c0_3 = arith.constant 0 : index
    %c0_4 = arith.constant 0 : index
    %3 = vector.load %arg3[%c0_3, %c0_4] : memref<1x32xf32, #tpu.memory_space<vmem>>, vector<1x32xf32>
    %4 = vector.broadcast %3 : vector<1x32xf32> to vector<16x32xf32>
    %5 = arith.addf %2, %4 : vector<16x32xf32>
    %cst_5 = arith.constant 0.000000e+00 : f32
    %6 = vector.broadcast %cst_5 : f32 to vector<16x32xf32>
    %7 = arith.maximumf %5, %6 : vector<16x32xf32>
    %8 = arith.truncf %7 : vector<16x32xf32> to vector<16x32xbf16>
    %c0_6 = arith.constant 0 : index
    %c0_7 = arith.constant 0 : index
    %9 = vector.load %arg4[%c0_6, %c0_7] : memref<16x32xbf16, #tpu.memory_space<vmem>>, vector<16x32xbf16>
    tpu.vector_store %arg4[%c0_6, %c0_7], %8 {strides = array<i32>} : memref<16x32xbf16, #tpu.memory_space<vmem>>, vector<16x32xbf16>,
    return
  }
  func.func @transform_0(%arg0: i32) -> (i32, i32) {
    %c0_i32 = arith.constant 0 : i32
    %c0_i32_0 = arith.constant 0 : i32
    return %arg0, %c0_i32 : i32, i32
  }
  func.func @transform_1(%arg0: i32) -> (i32, i32) {
    %c0_i32 = arith.constant 0 : i32
    %c0_i32_0 = arith.constant 0 : i32
    %c0_i32_1 = arith.constant 0 : i32
    return %c0_i32, %c0_i32_0 : i32, i32
  }
  func.func @transform_2(%arg0: i32) -> (i32, i32) {
    %c0_i32 = arith.constant 0 : i32
    %c0_i32_0 = arith.constant 0 : i32
    %c0_i32_1 = arith.constant 0 : i32
    return %c0_i32, %c0_i32_0 : i32, i32
  }
  func.func @transform_3(%arg0: i32) -> (i32, i32) {
    %c0_i32 = arith.constant 0 : i32
    %c0_i32_0 = arith.constant 0 : i32
    return %arg0, %c0_i32 : i32, i32
  }
}

</mosaic_0001>

<bundles_post_ra>
// kernel: tpu_custom_call.1
= control target key start
LH: loop header
LB: loop body
LE: loop exit
PB: predicated region body
PF: predicated region fallthrough
CT: control target
= control target key end

     0   :  { %8 = vsyncpa [#allocation3], 0  ;;  %s327_s0 = inlined_call_operand.hbm [shape: bf16[16,32], index: 0, kind: input, shape index: {}]   ;;  %s328_s1 = inlined_call_operand.hbm [shape: bf16[32,32], index: 1, kind: input, shape index: {}]   ;;  %s329_s2 = inlined_call_operand.vmem [shape: f32[1,32], index: 2, kind: input, shape index: {}]   ;;  %s330_s3 = inlined_call_operand.hbm [shape: bf16[16,32], index: 3, kind: output, shape index: {}]  }
   0x1   :  { %9 = vsyncpa [#allocation6], 0 }
   0x2   :  { %10 = vsyncpa [#allocation4], 0  ;;  %s252_s12 = smov [#allocation2]   ;;  %s180_s16 = scalar_lea.hbm %s327_s0, 128 }
   0x3   :  { %s16_s13 = sshll.u32 %s252_s12, 4  ;;  %p181_p0 = scmp.ne.s32.totalorder %s327_s0, %s180_s16  ;;  %s17_s13 = int_to_ptr.vmem [resolvable:$true] %s16_s13 }
   0x4   :  { %p184_p1 = scmp.lt.u32.totalorder %s180_s16, %s327_s0 }
   0x6   :  { %p186_p2 = pnand %p184_p1, %p181_p0 }
   0x8   :  { %189 = shalt.err (!%p186_p2)
}
   0x9   :  { %s190_s21 = scalar_lea.vmem %s17_s13, 128  ;;  %p195_p4 = scmp.lt.s32.totalorder %s17_s13, %s17_s13 }
   0xa   :  { %p191_p3 = scmp.ne.s32.totalorder %s17_s13, %s190_s21  ;;  %p196_p5 = scmp.lt.s32.totalorder %s190_s21, %s190_s21 }
   0xc   :  { %p197_p6 = por %p196_p5, %p195_p4 }
   0xe   :  { %p198_p7 = pnand %p197_p6, %p191_p3 }
  0x10   :  { %201 = shalt.err (!%p198_p7)
}
  0x11   :  { %s253_s22 = smov 64   ;;  %s254_s23 = smov 4  }
  0x12   :  { %22 = dma.hbm_to_vmem [thread:$0]  %s327_s0, 128, %s17_s13, [#allocation3], %s253_s22, %s253_s22, %s254_s23  }
  0x13   :  { %s255_s26 = smov [#allocation5]   ;;  %s202_s30 = scalar_lea.hbm %s328_s1, 256 }
  0x14   :  { %s28_s27 = sshll.u32 %s255_s26, 4  ;;  %p203_p8 = scmp.ne.s32.totalorder %s328_s1, %s202_s30  ;;  %s29_s27 = int_to_ptr.vmem [resolvable:$true] %s28_s27 }
  0x15   :  { %p206_p9 = scmp.lt.u32.totalorder %s202_s30, %s328_s1 }
  0x17   :  { %p208_p10 = pnand %p206_p9, %p203_p8 }
  0x19   :  { %211 = shalt.err (!%p208_p10)
}
  0x1a   :  { %s212_s8 = scalar_lea.vmem %s29_s27, 256  ;;  %p217_p12 = scmp.lt.s32.totalorder %s29_s27, %s29_s27 }
  0x1b   :  { %p213_p11 = scmp.ne.s32.totalorder %s29_s27, %s212_s8  ;;  %p218_p13 = scmp.lt.s32.totalorder %s212_s8, %s212_s8 }
  0x1d   :  { %p219_p0 = por %p218_p13, %p217_p12 }
  0x1f   :  { %p220_p1 = pnand %p219_p0, %p213_p11 }
  0x21   :  { %223 = shalt.err (!%p220_p1)
}
  0x22   :  { %34 = dma.hbm_to_vmem [thread:$0]  %s328_s1, 256, %s29_s27, [#allocation6], %s253_s22, %s253_s22, %s254_s23  }
  0x23   :  { %246 = dma.done.wait [#allocation3], 128  }
  0x24   :  { %247 = vsyncadd [#allocation3], 4294967168 }
  0x25   :  { %248 = dma.done.wait [#allocation6], 256  }
  0x26   :  { %249 = vsyncadd [#allocation6], 4294967040  ;;  %v256_v0 = vmov 0.0   ;;  %vm257_vm0 = vmmov 0   ;;  %v177_v1 = vld [vmem:[#allocation5] sm:$0xff]   ;;  %v178_v2 = vld [vmem:[#allocation5 + $0x8] sm:$0xff]  }
  0x27   :  { %162 = vmatprep.subr.bf16.mxu0 %v256_v0  ;;  %166 = vmatprep.mubr.msk.bf16.mxu0 %vm257_vm0, %v256_v0  ;;  %v179_v3 = vld [vmem:[#allocation2] sm:$0xff]   ;;  %vm74_vm1 = vcmask 261120   ;;  %vm129_vm2 = vcmask 257024   ;;  %s258_s1 = smov [#allocation7]  }
  0x28   :  { %163 = vmatpush3.bf16.msra.mxu0 %v177_v1  ;;  %v150_v4 = vld [vmem:[%s329_s2] ss:$0 sm:$0xff]  ;;  %s137_s12 = sshll.u32 %s258_s1, 4  ;;  %s138_s12 = int_to_ptr.vmem [resolvable:$true] %s137_s12 }
  0x29   :  { %164 = vmatprep.subr.bf16.mxu0 %v256_v0  ;;  %s224_s13 = scalar_lea.vmem %s138_s12, 128  ;;  %p229_p3 = scmp.lt.s32.totalorder %s138_s12, %s138_s12 }
  0x2a   :  { %p225_p2 = scmp.ne.s32.totalorder %s138_s12, %s224_s13  ;;  %p230_p4 = scmp.lt.s32.totalorder %s224_s13, %s224_s13 }
  0x2c   :  { %165 = vmatpush3.bf16.msra.mxu0 %v178_v2  ;;  %p231_p5 = por %p230_p4, %p229_p3 }
  0x2e   :  { %p232_p6 = pnand %p231_p5, %p225_p2 }
  0x2f   :  { %167 = vmatmul.mubr.msk.bf16.vlgmr.msra.gmra.mrb[0].mxu0 %vm74_vm1, %v179_v3 }
 0x102   :  { %v112_v5 = vpop.f32.mrb[0].mxu0 }
 0x103   :  { %v113_v6 = vadd.f32 %v150_v4, %v112_v5  ;;  %v168_v7 = vpop.f32.mrb[1].mxu0 }
 0x104   :  { %v115_v8 = vpop.f32.mrb[2].mxu0 }
 0x105   :  { %v119_v9 = vmax.f32 %v113_v6, 0.0  ;;  %v116_v10 = vadd.f32 %v150_v4, %v115_v8  ;;  %v169_v11 = vpop.f32.mrb[3].mxu0 }
 0x107   :  { %v157_v12 = vpack.c.bf16 %v119_v9, %v119_v9  ;;  %v120_v13 = vmax.f32 %v116_v10, 0.0 }
 0x109   :  { %v158_v14 = vpack.c.bf16 %v120_v13, %v120_v13  ;;  %130 = vst.msk [vmem:[#allocation7] sm:$0xf] %vm129_vm2, %v157_v12 }
 0x10b   :  { %131 = vst.msk [vmem:[#allocation7 + $0x4] sm:$0xf] %vm129_vm2, %v158_v14 }
 0x10c   :  { %235 = shalt.err (!%p232_p6)
}
 0x10d   :  { %s236_s15 = scalar_lea.hbm %s330_s3, 128 }
 0x10e   :  { %p237_p7 = scmp.ne.s32.totalorder %s330_s3, %s236_s15  ;;  %p240_p8 = scmp.lt.u32.totalorder %s236_s15, %s330_s3 }
 0x110   :  { %p242_p9 = pnand %p240_p8, %p237_p7 }
 0x112   :  { %245 = shalt.err (!%p242_p9)
}
 0x113   :  { %143 = dma.vmem_to_hbm [thread:$0]  %s138_s12, 128, %s330_s3, [#allocation4], %s253_s22, %s253_s22, %s254_s23  }
 0x114   :  { %250 = dma.done.wait [#allocation4], 128  }
 0x115   :  { %251 = vsyncadd [#allocation4], 4294967168 }
 0x116   :  { %147 = vsyncpa [#allocation3], 1 }
 0x117   :  { %148 = vsyncpa [#allocation6], 1 }
 0x118   :  { %149 = vsyncpa [#allocation4], 1 }

</bundles_post_ra>
